<compile_context>
chip_gen: v5e
topology: v5e:2x2
jax: 0.10.0
libtpu: 0.0.40
codegen_flags: <defaults>
</compile_context>

<pallas_src>
import functools

import jax
import jax.numpy as jnp
from jax.experimental import pallas as pl
from jax.experimental.pallas import tpu as pltpu

LANES = 128
SUBLANES = 8


def _max_block_rows():
    # 4096 rows x 128 lanes x 4 B = 2 MiB per input block; 2 inputs x 2
    # buffers = 8 MiB, safely inside v5e's 16 MiB scoped-VMEM default.
    # v6e / v7x (32 MiB scoped default) get 8192-row (4 MiB) blocks.
    try:
        kind = jax.devices()[0].device_kind.lower()
    except Exception:
        return 4096
    if "v6" in kind or "v7" in kind:
        return 8192
    return 4096


def _row_multiple(dtype):
    # Packed sub-32-bit dtypes need the second-minor block dim to be a
    # multiple of 16 (bf16/f16) or 32 (int8/bool).
    itemsize = jnp.dtype(dtype).itemsize
    return SUBLANES * max(1, 4 // max(1, itemsize))


def _tversky_sums_kernel(x_ref, t_ref, o_ref, *, rows, block_rows, ragged):
    j = pl.program_id(0)

    @pl.when(j == 0)
    def _():
        o_ref[...] = jnp.zeros_like(o_ref)

    x = x_ref[...].astype(jnp.float32)
    t = t_ref[...].astype(jnp.float32)

    if ragged:
        # Zero rows past the true row count (only the final block is actually
        # partial; the compare+select is negligible vs. the HBM stream time).
        valid = rows - j * block_rows
        row_ids = jax.lax.broadcasted_iota(jnp.int32, x.shape, 0)
        keep = row_ids < valid
        x = jnp.where(keep, x, 0.0)
        t = jnp.where(keep, t, 0.0)

    xt = x * t
    sub = block_rows // SUBLANES
    # Leading-axis folds are plain VPU vreg adds (no cross-lane XLU work, no
    # scalar stores) into one resident (8, 128) tile per running sum.
    fold = lambda a: a.reshape(sub, SUBLANES, LANES).sum(axis=0)
    o_ref[0] += fold(x)    # sum(x)
    o_ref[1] += fold(t)    # sum(t)
    o_ref[2] += fold(xt)   # sum(x * t) == TP


def tversky_loss(inputs, targets, alpha, beta, smooth=1.0):
    """Pallas TPU implementation of TverskyLoss.forward."""
    x = jnp.reshape(inputs, (-1,))
    t = jnp.reshape(targets, (-1,))
    n = x.shape[0]
    if n == 0:
        return jnp.float32(0.0)  # TP = FP = FN = 0  ->  1 - smooth/smooth

    # Only the rare sub-lane tail (n % 128 != 0) ever gets padded; zero
    # padding contributes exactly 0 to all three sums.
    lane_pad = (-n) % LANES
    if lane_pad:
        x = jnp.pad(x, (0, lane_pad))
        t = jnp.pad(t, (0, lane_pad))
    rows = (n + lane_pad) // LANES
    x2 = x.reshape(rows, LANES)
    t2 = t.reshape(rows, LANES)

    align = max(_row_multiple(x2.dtype), _row_multiple(t2.dtype))
    block_rows = max(align, min(_max_block_rows(), (rows // align) * align))
    n_blocks = -(-rows // block_rows)
    ragged = (rows % block_rows) != 0

    kernel = functools.partial(
        _tversky_sums_kernel, rows=rows, block_rows=block_rows, ragged=ragged)

    partials = pl.pallas_call(
        kernel,
        out_shape=jax.ShapeDtypeStruct((3, SUBLANES, LANES), jnp.float32),
        grid_spec=pltpu.PrefetchScalarGridSpec(
            num_scalar_prefetch=0,
            grid=(n_blocks,),
            in_specs=[
                pl.BlockSpec((block_rows, LANES), lambda j: (j, 0)),
                pl.BlockSpec((block_rows, LANES), lambda j: (j, 0)),
            ],
            out_specs=pl.BlockSpec((3, SUBLANES, LANES), lambda j: (0, 0, 0)),
        ),
        compiler_params=pltpu.CompilerParams(
            dimension_semantics=("arbitrary",)),
    )(x2, t2)

    # Tiny final cross-lane reduction + scalar combine outside the kernel.
    sx = jnp.sum(partials[0])
    st = jnp.sum(partials[1])
    tp = jnp.sum(partials[2])
    fp = sx - tp          # == sum((1 - t) * x)
    fn = st - tp          # == sum(t * (1 - x))
    tversky = (tp + smooth) / (tp + alpha * fp + beta * fn + smooth)
    return 1.0 - tversky


def _reference(inputs, targets, alpha, beta, smooth=1.0):
    x = jnp.reshape(inputs, (-1,)).astype(jnp.float32)
    t = jnp.reshape(targets, (-1,)).astype(jnp.float32)
    tp = jnp.sum(x * t)
    fp = jnp.sum((1.0 - t) * x)
    fn = jnp.sum(t * (1.0 - x))
    tversky = (tp + smooth) / (tp + alpha * fp + beta * fn + smooth)
    return 1.0 - tversky


if __name__ == "__main__":
    key = jax.random.PRNGKey(0)
    k1, k2 = jax.random.split(key)
    # Segmentation-style NCHW output: [2, 4, 16, 16]
    logits = jax.random.normal(k1, (2, 4, 16, 16), dtype=jnp.float32)
    inputs = jax.nn.sigmoid(logits)                            # probabilities
    targets = (jax.random.uniform(k2, (2, 4, 16, 16)) > 0.5).astype(jnp.float32)

    alpha, beta, smooth = 0.5, 0.5, 1.0
    out = tversky_loss(inputs, targets, alpha, beta, smooth)
    out = jax.block_until_ready(out)

    ref = _reference(inputs, targets, alpha, beta, smooth)
    assert jnp.allclose(out, ref, rtol=1e-5, atol=1e-5), (out, ref)
    print("KERNEL_OK")
</pallas_src>

<mosaic_0001>
module attributes {stable_mosaic.version = 11 : i64} {
  func.func @_tversky_sums_kernel(%arg0: i32, %arg1: memref<16x128xf32, #tpu.memory_space<vmem>>, %arg2: memref<16x128xf32, #tpu.memory_space<vmem>>, %arg3: memref<3x8x128xf32, #tpu.memory_space<vmem>>) attributes {dimension_semantics = [#tpu.dimension_semantics<arbitrary>], iteration_bounds = array<i64: 1>, scalar_prefetch = 0 : i64, scratch_operands = 0 : i64, tpu.core_type = #tpu.core_type<tc>, window_params = [{transform_indices = @transform_0, window_bounds = array<i64: 16, 128>}, {transform_indices = @transform_1, window_bounds = array<i64: 16, 128>}, {pipeline_mode = #tpu.pipeline_mode<synchronous>, transform_indices = @transform_2, window_bounds = array<i64: 3, 8, 128>}]} {
    %c0_i32 = arith.constant 0 : i32
    %0 = arith.cmpi eq, %arg0, %c0_i32 : i32
    %1 = arith.extui %0 : i1 to i32
    %c0_i32_0 = arith.constant 0 : i32
    %2 = arith.cmpi ne, %1, %c0_i32_0 : i32
    scf.if %2 {
      %cst_22 = arith.constant 0.000000e+00 : f32
      %30 = vector.broadcast %cst_22 : f32 to vector<3x8x128xf32>
      %c0_23 = arith.constant 0 : index
      %c0_24 = arith.constant 0 : index
      %c0_25 = arith.constant 0 : index
      %31 = vector.load %arg3[%c0_23, %c0_24, %c0_25] : memref<3x8x128xf32, #tpu.memory_space<vmem>>, vector<3x8x128xf32>
      tpu.vector_store %arg3[%c0_23, %c0_24, %c0_25], %30 {strides = array<i32>} : memref<3x8x128xf32, #tpu.memory_space<vmem>>, vector<3x8x128xf32>,
    } else {
    }
    %c0 = arith.constant 0 : index
    %c0_1 = arith.constant 0 : index
    %3 = vector.load %arg1[%c0, %c0_1] : memref<16x128xf32, #tpu.memory_space<vmem>>, vector<16x128xf32>
    %c0_2 = arith.constant 0 : index
    %c0_3 = arith.constant 0 : index
    %4 = vector.load %arg2[%c0_2, %c0_3] : memref<16x128xf32, #tpu.memory_space<vmem>>, vector<16x128xf32>
    %5 = arith.mulf %3, %4 : vector<16x128xf32>
    %c0_4 = arith.constant 0 : index
    %c0_5 = arith.constant 0 : index
    %c0_6 = arith.constant 0 : index
    %6 = vector.load %arg3[%c0_4, %c0_5, %c0_6] : memref<3x8x128xf32, #tpu.memory_space<vmem>>, vector<1x8x128xf32>
    %7 = vector.shape_cast %6 : vector<1x8x128xf32> to vector<8x128xf32>
    %8 = vector.shape_cast %3 : vector<16x128xf32> to vector<2x8x128xf32>
    %cst = arith.constant dense<0.000000e+00> : vector<8x128xf32>
    %9 = vector.multi_reduction <add>, %8, %cst [0] : vector<2x8x128xf32> to vector<8x128xf32>
    %10 = arith.addf %7, %9 : vector<8x128xf32>
    %c0_7 = arith.constant 0 : index
    %c0_8 = arith.constant 0 : index
    %c0_9 = arith.constant 0 : index
    %11 = vector.load %arg3[%c0_7, %c0_8, %c0_9] : memref<3x8x128xf32, #tpu.memory_space<vmem>>, vector<1x8x128xf32>
    %12 = vector.shape_cast %11 : vector<1x8x128xf32> to vector<8x128xf32>
    %13 = vector.shape_cast %10 : vector<8x128xf32> to vector<1x8x128xf32>
    tpu.vector_store %arg3[%c0_7, %c0_8, %c0_9], %13 {strides = array<i32>} : memref<3x8x128xf32, #tpu.memory_space<vmem>>, vector<1x8x128xf32>,
    %c1 = arith.constant 1 : index
    %c0_10 = arith.constant 0 : index
    %c0_11 = arith.constant 0 : index
    %14 = vector.load %arg3[%c1, %c0_10, %c0_11] : memref<3x8x128xf32, #tpu.memory_space<vmem>>, vector<1x8x128xf32>
    %15 = vector.shape_cast %14 : vector<1x8x128xf32> to vector<8x128xf32>
    %16 = vector.shape_cast %4 : vector<16x128xf32> to vector<2x8x128xf32>
    %cst_12 = arith.constant dense<0.000000e+00> : vector<8x128xf32>
    %17 = vector.multi_reduction <add>, %16, %cst_12 [0] : vector<2x8x128xf32> to vector<8x128xf32>
    %18 = arith.addf %15, %17 : vector<8x128xf32>
    %c1_13 = arith.constant 1 : index
    %c0_14 = arith.constant 0 : index
    %c0_15 = arith.constant 0 : index
    %19 = vector.load %arg3[%c1_13, %c0_14, %c0_15] : memref<3x8x128xf32, #tpu.memory_space<vmem>>, vector<1x8x128xf32>
    %20 = vector.shape_cast %19 : vector<1x8x128xf32> to vector<8x128xf32>
    %21 = vector.shape_cast %18 : vector<8x128xf32> to vector<1x8x128xf32>
    tpu.vector_store %arg3[%c1_13, %c0_14, %c0_15], %21 {strides = array<i32>} : memref<3x8x128xf32, #tpu.memory_space<vmem>>, vector<1x8x128xf32>,
    %c2 = arith.constant 2 : index
    %c0_16 = arith.constant 0 : index
    %c0_17 = arith.constant 0 : index
    %22 = vector.load %arg3[%c2, %c0_16, %c0_17] : memref<3x8x128xf32, #tpu.memory_space<vmem>>, vector<1x8x128xf32>
    %23 = vector.shape_cast %22 : vector<1x8x128xf32> to vector<8x128xf32>
    %24 = vector.shape_cast %5 : vector<16x128xf32> to vector<2x8x128xf32>
    %cst_18 = arith.constant dense<0.000000e+00> : vector<8x128xf32>
    %25 = vector.multi_reduction <add>, %24, %cst_18 [0] : vector<2x8x128xf32> to vector<8x128xf32>
    %26 = arith.addf %23, %25 : vector<8x128xf32>
    %c2_19 = arith.constant 2 : index
    %c0_20 = arith.constant 0 : index
    %c0_21 = arith.constant 0 : index
    %27 = vector.load %arg3[%c2_19, %c0_20, %c0_21] : memref<3x8x128xf32, #tpu.memory_space<vmem>>, vector<1x8x128xf32>
    %28 = vector.shape_cast %27 : vector<1x8x128xf32> to vector<8x128xf32>
    %29 = vector.shape_cast %26 : vector<8x128xf32> to vector<1x8x128xf32>
    tpu.vector_store %arg3[%c2_19, %c0_20, %c0_21], %29 {strides = array<i32>} : memref<3x8x128xf32, #tpu.memory_space<vmem>>, vector<1x8x128xf32>,
    return
  }
  func.func @transform_0(%arg0: i32) -> (i32, i32) {
    %c0_i32 = arith.constant 0 : i32
    %c0_i32_0 = arith.constant 0 : i32
    return %arg0, %c0_i32 : i32, i32
  }
  func.func @transform_1(%arg0: i32) -> (i32, i32) {
    %c0_i32 = arith.constant 0 : i32
    %c0_i32_0 = arith.constant 0 : i32
    return %arg0, %c0_i32 : i32, i32
  }
  func.func @transform_2(%arg0: i32) -> (i32, i32, i32) {
    %c0_i32 = arith.constant 0 : i32
    %c0_i32_0 = arith.constant 0 : i32
    %c0_i32_1 = arith.constant 0 : i32
    %c0_i32_2 = arith.constant 0 : i32
    return %c0_i32, %c0_i32_0, %c0_i32_1 : i32, i32, i32
  }
}

</mosaic_0001>

<bundles_post_ra>
// kernel: tpu_custom_call.1
= control target key start
LH: loop header
LB: loop body
LE: loop exit
PB: predicated region body
PF: predicated region fallthrough
CT: control target
= control target key end

     0   :  { %7 = vsyncpa [#allocation3], 0  ;;  %s213_s0 = inlined_call_operand.hbm [shape: f32[16,128], index: 0, kind: input, shape index: {}]   ;;  %s214_s1 = inlined_call_operand.hbm [shape: f32[16,128], index: 1, kind: input, shape index: {}]   ;;  %s215_s2 = inlined_call_operand.hbm [shape: f32[3,8,128], index: 2, kind: output, shape index: {}]  }
   0x1   :  { %8 = vsyncpa [#allocation6], 0 }
   0x2   :  { %9 = vsyncpa [#allocation4], 0  ;;  %s14_s11 = sshll.u32 %s213_s0, 4  ;;  %s175_s12 = smov [#allocation2]   ;;  %s15_s11 = int_to_ptr.hbm [resolvable:$true] %s14_s11 }
   0x3   :  { %s16_s13 = sshll.u32 %s175_s12, 4  ;;  %s27_s16 = sshll.u32 %s214_s1, 4  ;;  %s17_s13 = int_to_ptr.vmem [resolvable:$true] %s16_s13  ;;  %s28_s16 = int_to_ptr.hbm [resolvable:$true] %s27_s16 }
   0x4   :  { %s176_s17 = smov 128   ;;  %s177_s18 = smov 8  }
   0x5   :  { %22 = dma.hbm_to_vmem [thread:$0]  %s15_s11, 256, %s17_s13, [#allocation3], %s176_s17, %s176_s17, %s177_s18  }
   0x6   :  { %s178_s19 = smov [#allocation5]  }
   0x7   :  { %s29_s20 = sshll.u32 %s178_s19, 4  ;;  %s30_s20 = int_to_ptr.vmem [resolvable:$true] %s29_s20 }
   0x8   :  { %35 = dma.hbm_to_vmem [thread:$0]  %s28_s16, 256, %s30_s20, [#allocation6], %s176_s17, %s176_s17, %s177_s18  }
   0x9   :  { %169 = dma.done.wait [#allocation3], 256  }
   0xa   :  { %170 = vsyncadd [#allocation3], 4294967040 }
   0xb   :  { %171 = dma.done.wait [#allocation6], 256  }
   0xc   :  { %172 = vsyncadd [#allocation6], 4294967040  ;;  %v51_v0 = vld [vmem:[#allocation2] sm:$0xff]  ;;  %v52_v1 = vld [vmem:[#allocation2 + $0x8] sm:$0xff]  ;;  %s179_s0 = smov [#allocation7]   ;;  %s77_s23 = sshll.u32 %s215_s2, 4  ;;  %s78_s23 = int_to_ptr.hbm [resolvable:$true] %s77_s23 }
   0xd   :  { %v53_v2 = vld [vmem:[#allocation5] sm:$0xff]  ;;  %v58_v3 = vadd.f32 %v52_v1, %v51_v0  ;;  %v54_v4 = vld [vmem:[#allocation5 + $0x8] sm:$0xff]  ;;  %s75_s1 = sshll.u32 %s179_s0, 4  ;;  %s76_s1 = int_to_ptr.vmem [resolvable:$true] %s75_s1 }
   0xe   :  { %v55_v5 = vmul.f32 %v53_v2, %v51_v0  ;;  %v63_v6 = vadd.f32 %v54_v4, %v53_v2  ;;  %v56_v7 = vmul.f32 %v54_v4, %v52_v1 }
   0xf   :  { %60 = vst [vmem:[#allocation7] sm:$0xff] %v58_v3 }
  0x10   :  { %v68_v8 = vadd.f32 %v56_v7, %v55_v5  ;;  %65 = vst [vmem:[#allocation7 + $0x8] sm:$0xff] %v63_v6 }
  0x12   :  { %70 = vst [vmem:[#allocation7 + $0x10] sm:$0xff] %v68_v8 }
  0x13   :  { %83 = dma.vmem_to_hbm [thread:$0]  %s76_s1, 384, %s78_s23, [#allocation4], %s176_s17, %s176_s17, %s177_s18  }
  0x14   :  { %173 = dma.done.wait [#allocation4], 384  }
  0x15   :  { %174 = vsyncadd [#allocation4], 4294966912 }
  0x16   :  { %88 = vsyncpa [#allocation3], 1 }
  0x17   :  { %89 = vsyncpa [#allocation6], 1 }
  0x18   :  { %90 = vsyncpa [#allocation4], 1 }

</bundles_post_ra>
